<compile_context>
chip_gen: v6e
topology: v6e:2x2x1
jax: 0.10.0
libtpu: 0.0.40
codegen_flags: <defaults>
</compile_context>

<pallas_src>
from functools import partial

import jax
import jax.numpy as jnp
from jax import lax
from jax.experimental import pallas as pl
from jax.experimental.pallas import tpu as pltpu


def _round_up(x, m):
    return ((x + m - 1) // m) * m


def _vmem_budget():
    """Return (working-set budget for tile sizing, vmem_limit_bytes)."""
    cap = 64 << 20  # conservative default = v7x per-TensorCore VMEM
    try:
        info = pltpu.get_tpu_info()
        cap = int(getattr(info, "vmem_capacity_bytes", cap) or cap)
    except Exception:
        pass
    if cap >= (128 << 20):          # v5e / v6e: 128 MiB physical VMEM
        return 64 << 20, 96 << 20
    return 28 << 20, 48 << 20       # v7x: 64 MiB physical VMEM


def _choose_tile_m(n_rows, n_cols, p_item, t_item, budget_bytes):
    """Largest batch tile s.t. double-buffered inputs + f32 temps fit budget."""
    io_bytes_per_row = 2 * n_cols * (p_item + t_item)   # 2 pipeline bufs / input
    tmp_bytes_per_row = 5 * 4 * n_cols                  # ~5 f32 full-tile temps
    bytes_per_row = io_bytes_per_row + tmp_bytes_per_row
    tm = budget_bytes // max(bytes_per_row, 1)
    tm = max(8, min(int(tm), 1024))
    tm -= tm % 8                                        # sublane multiple
    tm = min(tm, _round_up(n_rows, 8))                  # never exceed padded N
    return max(tm, 8)


def _tce_kernel(preds_ref, target_ref, loss_ref, *, n_rows, tile_m, one_hot_targets):
    i = pl.program_id(0)

    preds = preds_ref[...].astype(jnp.float32)           # (TM, C) f32 for exp/log
    tgt = target_ref[...]                                 # native dtype, no cast
    tm, c = preds.shape

    if one_hot_targets:
        # For exact 0/1 targets: preds[row, argmax(target)] == sum(target*preds).
        picked = jnp.sum(tgt.astype(jnp.float32) * preds, axis=1, keepdims=True)
    else:
        # cat_labels = target.max(1).indices (FIRST max index on ties).
        row_max_t = jnp.max(tgt, axis=1, keepdims=True)            # (TM, 1)
        is_max = tgt >= row_max_t                                   # (TM, C) bool
        col = lax.broadcasted_iota(jnp.int32, (1, c), 1)            # (1, C)
        label = jnp.min(jnp.where(is_max, col, jnp.int32(c)),
                        axis=1, keepdims=True)                      # (TM, 1)
        picked = jnp.sum(jnp.where(col == label, preds, 0.0),
                         axis=1, keepdims=True)                     # (TM, 1)

    # Numerically stable log-sum-exp over classes.
    m = jnp.max(preds, axis=1, keepdims=True)                       # (TM, 1)
    lse = m + jnp.log(jnp.sum(jnp.exp(preds - m), axis=1, keepdims=True))

    per_row = lse - picked                                          # (TM, 1)
    if n_rows % tile_m != 0:
        # Mask padded rows of the ragged last tile with a SELECT (never a
        # multiply): garbage rows may hold Inf/NaN and must not leak.
        row = lax.broadcasted_iota(jnp.int32, (tm, 1), 0)
        valid = (i * tile_m + row) < n_rows
        per_row = jnp.where(valid, per_row, 0.0)

    partial = jnp.sum(per_row, axis=0, keepdims=True)               # (1, 1)
    # Lane-dense per-tile output: one cheap store per grid step.
    loss_ref[...] = jnp.broadcast_to(partial, (1, 128)).reshape(1, 1, 128)


def transform_cross_entropy_loss(preds, target, *, tile_m=None, one_hot_targets=False):
    """preds: (N, C) float logits; target: (N, C) float (one-hot or scores)."""
    n, c = preds.shape
    assert target.shape == (n, c)

    p_item = jnp.dtype(preds.dtype).itemsize
    t_item = jnp.dtype(target.dtype).itemsize

    budget, vmem_limit = _vmem_budget()
    tm = tile_m if tile_m is not None else _choose_tile_m(n, c, p_item, t_item, budget)
    grid_m = pl.cdiv(n, tm)

    kernel = partial(_tce_kernel, n_rows=n, tile_m=tm,
                     one_hot_targets=one_hot_targets)

    cost = pl.CostEstimate(
        flops=int(8 * n * c),
        transcendentals=int(n * c),
        bytes_accessed=int(n * c * (p_item + t_item) + grid_m * 128 * 4),
    )

    per_tile = pl.pallas_call(
        kernel,
        out_shape=jax.ShapeDtypeStruct((grid_m, 1, 128), jnp.float32),
        grid=(grid_m,),
        in_specs=[
            pl.BlockSpec((tm, c), lambda i: (i, 0)),
            pl.BlockSpec((tm, c), lambda i: (i, 0)),
        ],
        out_specs=pl.BlockSpec((1, 1, 128), lambda i: (i, 0, 0)),
        compiler_params=pltpu.CompilerParams(
            dimension_semantics=("parallel",),
            vmem_limit_bytes=vmem_limit,
        ),
        cost_estimate=cost,
    )(preds, target)

    # grid_m tiny partials; mean over the TRUE batch size in the wrapper.
    return jnp.sum(per_tile[:, 0, 0]) / n


def _reference(preds, target):
    labels = jnp.argmax(target.astype(jnp.float32), axis=1)
    logp = jax.nn.log_softmax(preds.astype(jnp.float32), axis=1)
    nll = -jnp.take_along_axis(logp, labels[:, None], axis=1)[:, 0]
    return jnp.mean(nll)


if __name__ == "__main__":
    key = jax.random.PRNGKey(0)
    k1, k2, k3, k4, k5, k6 = jax.random.split(key, 6)

    # Case 1: one-hot targets, multi-tile path (N divisible by the tile).
    n1, c1 = 16, 32
    preds1 = jax.random.normal(k1, (n1, c1), dtype=jnp.float32)
    labels1 = jax.random.randint(k2, (n1,), 0, c1)
    target1 = jax.nn.one_hot(labels1, c1, dtype=jnp.float32)
    loss1 = jax.block_until_ready(
        transform_cross_entropy_loss(preds1, target1, tile_m=8))
    ref1 = _reference(preds1, target1)
    assert jnp.allclose(loss1, ref1, rtol=1e-5, atol=1e-5), (loss1, ref1)

    # Case 2: soft/score targets, ragged last tile (N not a tile multiple).
    n2, c2 = 20, 48
    preds2 = jax.random.normal(k3, (n2, c2), dtype=jnp.float32)
    target2 = jax.random.uniform(k4, (n2, c2), dtype=jnp.float32)
    loss2 = jax.block_until_ready(
        transform_cross_entropy_loss(preds2, target2, tile_m=8))
    ref2 = _reference(preds2, target2)
    assert jnp.allclose(loss2, ref2, rtol=1e-5, atol=1e-5), (loss2, ref2)

    # Case 3: bf16 inputs, auto tile size; both the argmax path and the
    # one-hot fused multiply-reduce fast path must match the reference.
    n3, c3 = 16, 128
    preds3 = jax.random.normal(k5, (n3, c3), dtype=jnp.float32).astype(jnp.bfloat16)
    labels3 = jax.random.randint(k6, (n3,), 0, c3)
    target3 = jax.nn.one_hot(labels3, c3, dtype=jnp.bfloat16)
    loss3a = jax.block_until_ready(
        transform_cross_entropy_loss(preds3, target3))
    loss3b = jax.block_until_ready(
        transform_cross_entropy_loss(preds3, target3, one_hot_targets=True))
    ref3 = _reference(preds3, target3)
    assert jnp.allclose(loss3a, ref3, rtol=1e-5, atol=1e-5), (loss3a, ref3)
    assert jnp.allclose(loss3b, ref3, rtol=1e-5, atol=1e-5), (loss3b, ref3)

    print("KERNEL_OK")
</pallas_src>

<mosaic_0001>
module attributes {stable_mosaic.version = 11 : i64} {
  func.func @_tce_kernel(%arg0: i32, %arg1: memref<8x32xf32, #tpu.memory_space<vmem>>, %arg2: memref<8x32xf32, #tpu.memory_space<vmem>>, %arg3: memref<1x1x128xf32, #tpu.memory_space<vmem>>) attributes {dimension_semantics = [#tpu.dimension_semantics<parallel>], iteration_bounds = array<i64: 2>, scalar_prefetch = 0 : i64, scratch_operands = 0 : i64, tpu.core_type = #tpu.core_type<tc>, window_params = [{transform_indices = @transform_0, window_bounds = array<i64: 8, 32>}, {transform_indices = @transform_1, window_bounds = array<i64: 8, 32>}, {transform_indices = @transform_2, window_bounds = array<i64: 1, 1, 128>}]} {
    %c0 = arith.constant 0 : index
    %c0_0 = arith.constant 0 : index
    %0 = vector.load %arg1[%c0, %c0_0] : memref<8x32xf32, #tpu.memory_space<vmem>>, vector<8x32xf32>
    %c0_1 = arith.constant 0 : index
    %c0_2 = arith.constant 0 : index
    %1 = vector.load %arg2[%c0_1, %c0_2] : memref<8x32xf32, #tpu.memory_space<vmem>>, vector<8x32xf32>
    %cst = arith.constant dense<0xFF800000> : vector<8xf32>
    %2 = vector.multi_reduction <maximumf>, %1, %cst [1] : vector<8x32xf32> to vector<8xf32>
    %3 = vector.shape_cast %2 : vector<8xf32> to vector<8x1xf32>
    %4 = vector.broadcast %3 : vector<8x1xf32> to vector<8x32xf32>
    %5 = arith.cmpf oge, %1, %4 : vector<8x32xf32>
    %6 = tpu.iota {dimensions = array<i32: 1>} : vector<1x32xi32>
    %c32_i32 = arith.constant 32 : i32
    %7 = vector.shape_cast %6 : vector<1x32xi32> to vector<1x32xi32>
    %8 = vector.broadcast %7 : vector<1x32xi32> to vector<8x32xi32>
    %9 = vector.broadcast %c32_i32 : i32 to vector<8x32xi32>
    %10 = arith.select %5, %8, %9 : vector<8x32xi1>, vector<8x32xi32>
    %cst_3 = arith.constant dense<2147483647> : vector<8xi32>
    %11 = vector.multi_reduction <minsi>, %10, %cst_3 [1] : vector<8x32xi32> to vector<8xi32>
    %12 = vector.shape_cast %11 : vector<8xi32> to vector<8x1xi32>
    %13 = vector.broadcast %6 : vector<1x32xi32> to vector<8x32xi32>
    %14 = vector.broadcast %12 : vector<8x1xi32> to vector<8x32xi32>
    %15 = arith.cmpi eq, %13, %14 : vector<8x32xi32>
    %cst_4 = arith.constant 0.000000e+00 : f32
    %16 = vector.broadcast %cst_4 : f32 to vector<8x32xf32>
    %17 = arith.select %15, %0, %16 : vector<8x32xi1>, vector<8x32xf32>
    %cst_5 = arith.constant dense<0.000000e+00> : vector<8xf32>
    %18 = vector.multi_reduction <add>, %17, %cst_5 [1] : vector<8x32xf32> to vector<8xf32>
    %19 = vector.shape_cast %18 : vector<8xf32> to vector<8x1xf32>
    %cst_6 = arith.constant dense<0xFF800000> : vector<8xf32>
    %20 = vector.multi_reduction <maximumf>, %0, %cst_6 [1] : vector<8x32xf32> to vector<8xf32>
    %21 = vector.shape_cast %20 : vector<8xf32> to vector<8x1xf32>
    %22 = vector.broadcast %21 : vector<8x1xf32> to vector<8x32xf32>
    %23 = arith.subf %0, %22 : vector<8x32xf32>
    %24 = math.exp %23 : vector<8x32xf32>
    %cst_7 = arith.constant dense<0.000000e+00> : vector<8xf32>
    %25 = vector.multi_reduction <add>, %24, %cst_7 [1] : vector<8x32xf32> to vector<8xf32>
    %26 = vector.shape_cast %25 : vector<8xf32> to vector<8x1xf32>
    %27 = math.log %26 : vector<8x1xf32>
    %28 = arith.addf %21, %27 : vector<8x1xf32>
    %29 = arith.subf %28, %19 : vector<8x1xf32>
    %cst_8 = arith.constant dense<0.000000e+00> : vector<1xf32>
    %30 = vector.multi_reduction <add>, %29, %cst_8 [0] : vector<8x1xf32> to vector<1xf32>
    %31 = vector.shape_cast %30 : vector<1xf32> to vector<1x1xf32>
    %32 = vector.shape_cast %31 : vector<1x1xf32> to vector<1x1xf32>
    %33 = vector.broadcast %32 : vector<1x1xf32> to vector<1x128xf32>
    %34 = vector.shape_cast %33 : vector<1x128xf32> to vector<1x1x128xf32>
    %c0_9 = arith.constant 0 : index
    %c0_10 = arith.constant 0 : index
    %c0_11 = arith.constant 0 : index
    %35 = vector.load %arg3[%c0_9, %c0_10, %c0_11] : memref<1x1x128xf32, #tpu.memory_space<vmem>>, vector<1x1x128xf32>
    tpu.vector_store %arg3[%c0_9, %c0_10, %c0_11], %34 {strides = array<i32>} : memref<1x1x128xf32, #tpu.memory_space<vmem>>, vector<1x1x128xf32>,
    return
  }
  func.func @transform_0(%arg0: i32) -> (i32, i32) {
    %c0_i32 = arith.constant 0 : i32
    %c0_i32_0 = arith.constant 0 : i32
    return %arg0, %c0_i32 : i32, i32
  }
  func.func @transform_1(%arg0: i32) -> (i32, i32) {
    %c0_i32 = arith.constant 0 : i32
    %c0_i32_0 = arith.constant 0 : i32
    return %arg0, %c0_i32 : i32, i32
  }
  func.func @transform_2(%arg0: i32) -> (i32, i32, i32) {
    %c0_i32 = arith.constant 0 : i32
    %c0_i32_0 = arith.constant 0 : i32
    %c0_i32_1 = arith.constant 0 : i32
    return %arg0, %c0_i32, %c0_i32_0 : i32, i32, i32
  }
}

</mosaic_0001>

<bundles_post_ra>
// kernel: tpu_custom_call.1
= control target key start
LH: loop header
LB: loop body
LE: loop exit
PB: predicated region body
PF: predicated region fallthrough
CT: control target
= control target key end

     0   :  { %7 = vsyncpa [#allocation3], 0  ;;  %s759_s0 = inlined_call_operand.hbm [shape: f32[16,32], index: 0, kind: input, shape index: {}]   ;;  %s760_s1 = inlined_call_operand.hbm [shape: f32[16,32], index: 1, kind: input, shape index: {}]   ;;  %s761_s2 = inlined_call_operand.hbm [shape: f32[2,1,128], index: 2, kind: output, shape index: {}]  }
   0x1   :  { %9 = vsyncpa [#allocation3 + $0x1], 0 }
   0x2   :  { %10 = vsyncpa [#allocation6], 0 }
   0x3   :  { %12 = vsyncpa [#allocation6 + $0x1], 0 }
   0x4   :  { %13 = vsyncpa [#allocation4], 0 }
   0x5   :  { %15 = vsyncpa [#allocation4 + $0x1], 0  ;;  %s559_s9 = smov 0   ;;  %s561_s10 = smov 0  }
   0x6   :  { %s563_s11 = smov 0   ;;  %s565_s12 = smov 0  }
   0x7 LB: > { %s580_s13 = sadd.s32 4294967295, %s539_s12   ;;  %s347_s14 = sadd.s32 4294967294, %s539_s12   ;;  %s539_s12 = sphi %s565_s12, %s780_s12   ;;  %s535_s11 = sphi %s563_s11, %s779_s11   ;;  %s531_s10 = sphi %s561_s10, %s778_s10   ;;  %s527_s9 = sphi %s559_s9, %s777_s9  }
   0x8   : > { %s584_s15 = sadd.s32 1, %s539_s12   ;;  %s28_s16 = sadd.s32 1, %s535_s11 }
   0x9   : > { %s25_s17 = ssub.s32 %s539_s12, %s584_s15  ;;  %p35_p0 = scmp.ne.s32.totalorder %s535_s11, %s531_s10 }
   0xa   : > { %p26_p1 = scmp.eq.s32.totalorder %s25_s17, 0  ;;  %p36_p2 = scmp.eq.s32.totalorder %s539_s12, 0 }
   0xb   : > { %p41_p3 = scmp.ne.s32.totalorder %s531_s10, %s527_s9  ;;  %p42_p4 = scmp.eq.s32.totalorder %s580_s13, 0 }
   0xc   : > { %s596_s18 = scalar_select %p26_p1, %s535_s11, %s28_s16  }
   0xd   : > { %p598_p5 = por %p36_p2, %p35_p0  ;;  %p602_p6 = por %p42_p4, %p41_p3 }
   0xe   : > { %p91_p7 = scmp.eq.s32.totalorder %s580_s13, 1  ;;  %p97_p8 = scmp.eq.s32.totalorder %s347_s14, 1 }
   0xf   : > { %s765_s20 = scalar_select %p602_p6, 1, 0 }
  0x10   : > { %p377_p10 = scmp.lt.s32.totalorder %s539_s12, 2  ;;  %p609_p11 = por %p91_p7, %p35_p0 }
  0x11   : > { %p613_p12 = por %p97_p8, %p41_p3  ;;  %s618_s23 = sand.u32 1, %s535_s11  }
  0x12   : > { %s766_s21 = scalar_select %p609_p11, 1, 0 }
  0x13   : > { %s767_s22 = scalar_select %p613_p12, 1, 0 }
  0x14   : > { %s351_s24 = sshll.u32 %s539_s12, 7  ;;  %s350_s25 = sshll.u32 %s618_s23, 3 }
  0x15   : > { %s627_s28 = scalar_lea.hbm %s759_s0, %s351_s24  ;;  %s121_s29 = scalar_lea.vmem [#allocation2], %s350_s25 }
  0x16   : > { %s128_s30 = sshll.u32 %s121_s29, 4  ;;  %p633_p13 = pnand %p377_p10, %p598_p5  ;;  %s637_s30 = int_to_ptr.vmem [resolvable:$true] %s128_s30 }
  0x17   : > { %s118_s4 = scalar_lea.sflag [#allocation3], %s618_s23  ;;  %s415_s5 = scalar_lea.hbm %s627_s28, 128 }
  0x18   : > { %p416_p2 = scmp.ne.s32.totalorder %s627_s28, %s415_s5  ;;  %p417_p3 = pneg %p633_p13 }
  0x19   : > { %s420_s8 = scalar_lea.hbm %s759_s0, 256  ;;  %p421_p5 = scmp.lt.s32.totalorder %s627_s28, %s759_s0 }
  0x1a   : > { %p418_p4 = pnand %p417_p3, %p416_p2  ;;  %p422_p8 = scmp.lt.s32.totalorder %s420_s8, %s415_s5 }
  0x1c   : > { %p419_p7 = pneg %p418_p4  ;;  %p423_p10 = por %p422_p8, %p421_p5 }
  0x1e   : > { %p424_p9 = pnand %p423_p10, %p419_p7 }
  0x20   : > { %427 = shalt.err (!%p424_p9)
}
  0x21   : > { %s428_s17 = scalar_lea.vmem %s637_s30, 128  ;;  %s541_s19 = smov [#allocation2]  }
  0x22   : > { %p429_p0 = scmp.ne.s32.totalorder %s637_s30, %s428_s17  ;;  %s433_s26 = sshll.u32 %s541_s19, 4  ;;  %s434_s26 = int_to_ptr.vmem [resolvable:$false] %s433_s26 }
  0x23   : > { %s435_s27 = scalar_lea.vmem %s434_s26, 256  ;;  %p436_p1 = scmp.lt.s32.totalorder %s637_s30, %s434_s26 }
  0x24   : > { %p431_p2 = pnand %p429_p0, %p417_p3  ;;  %p437_p12 = scmp.lt.s32.totalorder %s435_s27, %s428_s17 }
  0x26   : > { %p432_p4 = pneg %p431_p2  ;;  %p438_p11 = por %p437_p12, %p436_p1 }
  0x28   : > { %p439_p5 = pnand %p438_p11, %p432_p4 }
  0x2a   : > { %442 = shalt.err (!%p439_p5)
}
  0x2b   : > { %369 = dma.hbm_to_vmem [thread:$0]  (!%p633_p13), %s627_s28, 128, %s637_s30, %s118_s4  }
  0x2c   : > { %p769_p9 = scmp.lt.s32.totalorder %s539_s12, 3  ;;  %p770_p0 = scmp.ge.s32.totalorder %s539_s12, 1 }
  0x2d   : > { %s679_s7 = scalar_lea.hbm %s760_s1, %s351_s24  ;;  %s139_s8 = scalar_lea.vmem [#allocation5], %s350_s25 }
  0x2e   : > { %p670_p7 = pnand %p770_p0, %p769_p9  ;;  %s146_s14 = sshll.u32 %s139_s8, 4  ;;  %s147_s14 = int_to_ptr.vmem [resolvable:$true] %s146_s14 }
  0x2f   : > { %s136_s28 = scalar_lea.sflag [#allocation6], %s618_s23  ;;  %s443_s30 = scalar_lea.hbm %s679_s7, 128 }
  0x30   : > { %s771_s29 = scalar_select %p670_p7, 1, 0 }
  0x31   : > { %p444_p11 = scmp.ne.s32.totalorder %s679_s7, %s443_s30  ;;  %s448_s17 = scalar_lea.hbm %s760_s1, 256 }
  0x32   : > { %p449_p8 = scmp.lt.s32.totalorder %s679_s7, %s760_s1  ;;  %p450_p10 = scmp.lt.s32.totalorder %s448_s17, %s443_s30 }
  0x33   : > { %p446_p12 = pnand %p444_p11, %p417_p3 }
  0x34   : > { %p451_p2 = por %p450_p10, %p449_p8 }
  0x35   : > { %p447_p1 = pneg %p446_p12 }
  0x37   : > { %p452_p4 = pnand %p451_p2, %p447_p1 }
  0x39   : > { %455 = shalt.err (!%p452_p4)
}
  0x3a   : > { %s456_s25 = scalar_lea.vmem %s147_s14, 128  ;;  %s542_s23 = smov [#allocation5]  }
  0x3b   : > { %p457_p5 = scmp.ne.s32.totalorder %s147_s14, %s456_s25  ;;  %s461_s26 = sshll.u32 %s542_s23, 4  ;;  %s462_s26 = int_to_ptr.vmem [resolvable:$false] %s461_s26 }
  0x3c   : > { %s463_s27 = scalar_lea.vmem %s462_s26, 256  ;;  %p464_p11 = scmp.lt.s32.totalorder %s147_s14, %s462_s26 }
  0x3d   : > { %p459_p9 = pnand %p457_p5, %p417_p3  ;;  %p465_p12 = scmp.lt.s32.totalorder %s463_s27, %s456_s25 }
  0x3f   : > { %p460_p0 = pneg %p459_p9  ;;  %p466_p6 = por %p465_p12, %p464_p11 }
  0x41   : > { %p467_p7 = pnand %p466_p6, %p460_p0 }
  0x43   : > { %470 = shalt.err (!%p467_p7)
}
  0x44   : > { %372 = dma.hbm_to_vmem [thread:$0]  (!%p633_p13), %s679_s7, 128, %s147_s14, %s136_s28  }
  0x45   : > { %p772_p1 = scmp.ne.s32.totalorder %s771_s29, 0 }
  0x46   : > { %s705_s5 = sand.u32 (!%p772_p1), 1, %s531_s10   ;;  %p773_p3 = scmp.ne.s32.totalorder (!%p772_p1), %s765_s20, 0 }
  0x47   : > { %155 = sbr.rel (%p772_p1) target bundleno = 676 (0x2a4), region = 28  ;;  %s355_s6 = sshll.u32 (!%p772_p1), %s705_s5, 3 }
  0x48   : > { %s158_s8 = scalar_lea.sflag (!%p772_p1), [#allocation3], %s705_s5  ;;  %s161_s30 = scalar_lea.vmem (!%p772_p1), [#allocation2], %s355_s6 }
  0x4c   : > { %514 = dma.done.wait (%p773_p3), %s158_s8, 128  }
  0x4d   : > { %516 = vsyncadd (%p773_p3), %s158_s8, 4294967168  ;;  %s167_s3 = scalar_lea.sflag [#allocation6], %s705_s5  ;;  %s170_s7 = scalar_lea.vmem [#allocation5], %s355_s6 }
  0x4e   : > { %518 = dma.done.wait (%p773_p3), %s167_s3, 128  }
  0x4f   : > { %520 = vsyncadd (%p773_p3), %s167_s3, 4294967168  ;;  %vm197_vm0 = vcmask 261120   ;;  %v196_v0 = vld [vmem:[%s170_s7] sm:$0xff]  ;;  %v195_v1 = vld [vmem:[%s161_s30] sm:$0xff]  ;;  %v202_v4 = vlaneseq  ;;  %s357_s20 = sshll.u32 %s580_s13, 4  ;;  %s194_s29 = scalar_lea.vmem [#allocation7], %s705_s5 }
  0x50   : > { %v198_v2 = vsel %vm197_vm0, %v196_v0, -inf  ;;  %v225_v3 = vsel %vm197_vm0, %v195_v1, -inf  ;;  %s258_s14 = sshll.u32 %s194_s29, 4  ;;  %s256_s16 = scalar_lea.hbm %s761_s2, %s357_s20  ;;  %s259_s14 = int_to_ptr.vmem [resolvable:$true] %s258_s14 }
  0x51   : > { %199 = vmax.xlane.f32.xlu0 %v198_v2  ;;  %226 = vmax.xlane.f32.xlu1 %v225_v3  ;;  %v203_v5 = vand.u32 127, %v202_v4  ;;  %s246_s17 = scalar_lea.sflag [#allocation4], %s705_s5  ;;  %s471_s24 = scalar_lea.vmem %s259_s14, 16 }
  0x52   : > { %p472_p6 = scmp.ne.s32.totalorder %s259_s14, %s471_s24  ;;  %p774_p13 = scmp.ne.s32.totalorder %s766_s21, 0 }
  0x53   : > { %s543_s19 = smov [#allocation7]  }
  0x54   : > { %p473_p7 = pnand %p472_p6, %p774_p13  ;;  %s475_s25 = sshll.u32 %s543_s19, 4  ;;  %s476_s25 = int_to_ptr.vmem [resolvable:$false] %s475_s25 }
  0x55   : > { %s477_s13 = scalar_lea.vmem %s476_s25, 32  ;;  %p478_p10 = scmp.lt.s32.totalorder %s259_s14, %s476_s25 }
  0x56   : > { %p474_p8 = pneg %p473_p7  ;;  %p479_p2 = scmp.lt.s32.totalorder %s477_s13, %s471_s24 }
  0x58   : > { %p480_p4 = por %p479_p2, %p478_p10 }
  0x5a   : > { %p481_p5 = pnand %p480_p4, %p474_p8 }
  0xda   : > { %v200_v6 = vpop.xlane.xlu0 %199  ;;  %v227_v7 = vpop.xlane.xlu1 %226 }
  0xdb   : > { %vm201_vm1 = vcmp.ge.f32.partialorder %v196_v0, %v200_v6  ;;  %v228_v8 = vsub.f32 %v195_v1, %v227_v7 }
  0xdc   : > { %v204_v9 = vsel %vm201_vm1, %v203_v5, 32 }
  0xdd   : > { %v205_v10 = vsel %vm197_vm0, %v204_v9, 2147483647  ;;  %v229_v11 = vmul.f32 1.442695, %v228_v8 }
  0xde   : > { %v207_v12 = vshra.s32 %v205_v10, 16  ;;  %v206_v16 = vand.u32 65535, %v205_v10 }
  0xdf   : > { %411 = vpow2.f32 %v229_v11 }
  0xe0   : > { %v209_v13 = vcvt.s32.f32 %v207_v12  ;;  %v208_v18 = vcvt.s32.f32 %v206_v16 }
  0xe2   : > { %210 = vmin.xlane.f32.xlu0 %v209_v13 }
  0xec   : > { %v412_v14 = vpop.eup %411 }
  0xed   : > { %v231_v15 = vsel %vm197_vm0, %v412_v14, 0.0 }
  0xee   : > { %232 = vadd.xlane.f32.xlu0 %v231_v15 }
 0x16b   : > { %v211_v17 = vpop.xlane.xlu0 %210 }
 0x16c   : > { %vm212_vm2 = vcmp.eq.f32.partialorder %v209_v13, %v211_v17  ;;  %v217_v20 = vcvt.f32.s32 %v211_v17 }
 0x16d   : > { %v213_v19 = vsel %vm212_vm2, %v208_v18, inf }
 0x16e   : > { %214 = vmin.xlane.f32.xlu1 %v213_v19  ;;  %v218_v22 = vshll.u32 %v217_v20, 16 }
 0x177   : > { %v233_v27 = vpop.xlane.xlu0 %232 }
 0x178   : > { %413 = vlog2.f32 %v233_v27 }
 0x185   : > { %v414_v28 = vpop.eup %413 }
 0x186   : > { %v235_v29 = vmul.f32 0.6931472, %v414_v28 }
 0x188   : > { %v236_v30 = vadd.f32 %v235_v29, %v227_v7 }
 0x1f7   : > { %v215_v21 = vpop.xlane.xlu1 %214 }
 0x1f8   : > { %v216_v23 = vcvt.f32.s32 %v215_v21 }
 0x1fa   : > { %v219_v24 = vadd.s32 %v218_v22, %v216_v23 }
 0x1fc   : > { %vm220_vm3 = vcmp.eq.s32.totalorder %v203_v5, %v219_v24 }
 0x1fd   : > { %v221_v25 = vsel %vm220_vm3, %v195_v1, 0.0 }
 0x1fe   : > { %v222_v26 = vsel %vm197_vm0, %v221_v25, 0.0 }
 0x1ff   : > { %223 = vadd.xlane.f32.xlu1 %v222_v26 }
 0x288   : > { %v224_v31 = vpop.xlane.xlu1 %223 }
 0x289   : > { %v237_v32 = vsub.f32 %v236_v30, %v224_v31 }
 0x28b   : > { %v238_v33 = vrot.slane %v237_v32, 4 }
 0x28d   : > { %v239_v34 = vadd.f32 %v238_v33, %v237_v32 }
 0x28f   : > { %v240_v35 = vrot.slane %v239_v34, 2 }
 0x291   : > { %v241_v36 = vadd.f32 %v240_v35, %v239_v34 }
 0x293   : > { %v242_v37 = vrot.slane %v241_v36, 1 }
 0x295   : > { %v243_v38 = vadd.f32 %v242_v37, %v241_v36 }
 0x297   : > { %244 = vst [vmem:[%s194_s29] sm:$0x1] %v243_v38 }
 0x298   : > { %484 = shalt.err (!%p481_p5)
}
 0x299   : > { %s485_s23 = scalar_lea.hbm %s256_s16, 16  ;;  %s489_s5 = scalar_lea.hbm %s761_s2, 32 }
 0x29a   : > { %p486_p9 = scmp.ne.s32.totalorder %s256_s16, %s485_s23  ;;  %p490_p12 = scmp.lt.s32.totalorder %s256_s16, %s761_s2 }
 0x29b   : > { %p491_p1 = scmp.lt.s32.totalorder %s489_s5, %s485_s23 }
 0x29c   : > { %p487_p0 = pnand %p486_p9, %p774_p13 }
 0x29d   : > { %p492_p3 = por %p491_p1, %p490_p12 }
 0x29e   : > { %p488_p11 = pneg %p487_p0 }
 0x2a0   : > { %p493_p6 = pnand %p492_p3, %p488_p11 }
 0x2a2   : > { %496 = shalt.err (!%p493_p6)
}
 0x2a3   : > { %364 = dma.vmem_to_hbm [thread:$0]  (%p774_p13), %s259_s14, 16, %s256_s16, %s246_s17  }
 0x2a4 PF: > { %s270_s30 = sand.u32 1, %s527_s9   ;;  %p775_p7 = scmp.ne.s32.totalorder %s767_s22, 0 }
 0x2a5   : > { %p776_p8 = scmp.ge.s32.totalorder %s539_s12, 2  ;;  %s271_s3 = scalar_lea.sflag [#allocation4], %s270_s30 }
 0x2a7   : > { %p374_p10 = pnand %p776_p8, %p775_p7 }
 0x2a9   : > { %p375_p2 = pneg %p374_p10 }
 0x2ab   : > { %522 = dma.done.wait (%p375_p2), %s271_s3, 16  }
 0x2ac   : > { %524 = vsyncadd (%p375_p2), %s271_s3, 4294967280  ;;  %p18_p4 = scmp.ge.s32.totalorder %s584_s15, 4   ;;  %s777_s9 = smov %s531_s10 }
 0x2ad   : > { %s778_s10 = smov %s535_s11  ;;  %s779_s11 = smov %s596_s18 }
 0x2ae   : > { %s780_s12 = smov %s584_s15  ;;  %20 = sbr.rel (!%p18_p4) target bundleno = 7 (0x7), region = 86 }
 0x2b3   :  { %275 = vsyncpa [#allocation3], 1 }
 0x2b4   :  { %277 = vsyncpa [#allocation3 + $0x1], 1 }
 0x2b5   :  { %278 = vsyncpa [#allocation6], 1 }
 0x2b6   :  { %280 = vsyncpa [#allocation6 + $0x1], 1 }
 0x2b7   :  { %281 = vsyncpa [#allocation4], 1 }
 0x2b8   :  { %283 = vsyncpa [#allocation4 + $0x1], 1 }

</bundles_post_ra>
